<compile_context>
chip_gen: v7x
topology: tpu7x:2x2x1
jax: 0.10.0
libtpu: 0.0.40
codegen_flags: <defaults>
</compile_context>

<pallas_src>
import functools
from functools import partial
from typing import NamedTuple, Optional

import jax
import jax.numpy as jnp
from jax.experimental import pallas as pl
from jax.experimental.pallas import tpu as pltpu

_VMEM_LIMIT = 32 * 1024 * 1024


def _round_up(x, m):
    return (x + m - 1) // m * m


class ConvMeta(NamedTuple):
    kh: int
    kw: int
    stride: int
    padding: int
    dilation: int
    cin: int
    cout: int
    direct: bool


class BlockMeta(NamedTuple):
    conv1: ConvMeta
    conv2: ConvMeta
    conv3: ConvMeta
    down: Optional[ConvMeta]


# ----------------------------------------------------------------------------
# Pallas GEMM kernel: C = relu(A @ B + bias [+ residual])
#   A (TM,Kp) bf16 streamed, B (Kp,Np) bf16 VMEM-resident, bias (1,Np) f32,
#   residual (TM,Np) bf16.  Single K step, fp32 MXU accumulate.
# ----------------------------------------------------------------------------

def _gemm_kernel(a_ref, b_ref, bias_ref, *rest, relu, has_res):
    if has_res:
        res_ref, o_ref = rest
    else:
        (o_ref,) = rest
    acc = jnp.dot(a_ref[...], b_ref[...], preferred_element_type=jnp.float32)
    acc = acc + bias_ref[...]
    if has_res:
        acc = acc + res_ref[...].astype(jnp.float32)
    if relu:
        acc = jnp.maximum(acc, 0.0)
    o_ref[...] = acc.astype(o_ref.dtype)


def _gemm(a_p, b_p, bias_p, res_p, *, relu, out_dtype, TM):
    Mp, Kp = a_p.shape
    _, Np = b_p.shape
    m_tiles = Mp // TM
    # v7x megacore: if there is only a single M tile, split N so both TensorCores
    # get a block; otherwise keep N whole so the weight stays VMEM-resident.
    if m_tiles == 1 and Np % 256 == 0:
        TN = Np // 2
    else:
        TN = Np
    grid = (m_tiles, Np // TN)
    has_res = res_p is not None

    in_specs = [
        pl.BlockSpec((TM, Kp), lambda i, j: (i, 0)),    # streamed activations
        pl.BlockSpec((Kp, TN), lambda i, j: (0, j)),    # weight: constant index -> fetched once
        pl.BlockSpec((1, TN), lambda i, j: (0, j)),     # bias: resident
    ]
    inputs = [a_p, b_p, bias_p]
    if has_res:
        in_specs.append(pl.BlockSpec((TM, TN), lambda i, j: (i, j)))
        inputs.append(res_p)

    return pl.pallas_call(
        functools.partial(_gemm_kernel, relu=relu, has_res=has_res),
        out_shape=jax.ShapeDtypeStruct((Mp, Np), out_dtype),
        grid_spec=pltpu.PrefetchScalarGridSpec(
            num_scalar_prefetch=0,
            grid=grid,
            in_specs=in_specs,
            out_specs=pl.BlockSpec((TM, TN), lambda i, j: (i, j)),
        ),
        compiler_params=pltpu.CompilerParams(
            dimension_semantics=("parallel", "parallel"),
            vmem_limit_bytes=_VMEM_LIMIT),
    )(*inputs)


# ----------------------------------------------------------------------------
# Direct 3x3 (stride-1) conv kernel: taps folded into the MXU reduction,
# padded activation read in place (no im2col blow-up in HBM).
# ----------------------------------------------------------------------------

def _dconv_kernel(x_ref, w_ref, bias_ref, o_ref, *, kh, kw, dil, relu):
    # x_ref: (Hp, Wp, Cin) bf16, w_ref: (kh*kw, Cin, Cout) bf16 (resident),
    # bias_ref: (1, Cout) f32, o_ref: (Ho, Wo, Cout) bf16
    Ho, Wo, cop = o_ref.shape
    bias_row = bias_ref[...]

    def row_body(h, carry):
        acc = jnp.zeros((Wo, cop), jnp.float32)
        for i in range(kh):
            row = x_ref[h + i * dil]                    # (Wp, Cin), dynamic H index
            for j in range(kw):
                a = row[j * dil:j * dil + Wo, :]        # static W window
                acc = acc + jnp.dot(a, w_ref[i * kw + j],
                                    preferred_element_type=jnp.float32)
        acc = acc + bias_row
        if relu:
            acc = jnp.maximum(acc, 0.0)
        o_ref[h] = acc.astype(o_ref.dtype)
        return carry

    jax.lax.fori_loop(0, Ho, row_body, 0)


def _conv_direct(x, w, bias, meta, relu):
    pad, dil = meta.padding, meta.dilation
    N, H, W, Cin = x.shape
    xp = jnp.pad(x.astype(jnp.bfloat16),
                 ((0, 0), (pad, pad), (pad, pad), (0, 0)))
    Hp, Wp = H + 2 * pad, W + 2 * pad
    cout = meta.cout
    # TODO(synk): with batch=1 one v7x TensorCore idles (grid has a single block).
    return pl.pallas_call(
        functools.partial(_dconv_kernel, kh=meta.kh, kw=meta.kw, dil=dil,
                          relu=relu),
        out_shape=jax.ShapeDtypeStruct((N, H, W, cout), jnp.bfloat16),
        grid_spec=pltpu.PrefetchScalarGridSpec(
            num_scalar_prefetch=0,
            grid=(N,),
            in_specs=[
                pl.BlockSpec((None, Hp, Wp, Cin), lambda n: (n, 0, 0, 0)),
                pl.BlockSpec((meta.kh * meta.kw, Cin, cout),
                             lambda n: (0, 0, 0)),
                pl.BlockSpec((1, cout), lambda n: (0, 0)),
            ],
            out_specs=pl.BlockSpec((None, H, W, cout), lambda n: (n, 0, 0, 0)),
        ),
        compiler_params=pltpu.CompilerParams(
            dimension_semantics=("parallel",),
            vmem_limit_bytes=_VMEM_LIMIT),
    )(xp, w, bias)


# ----------------------------------------------------------------------------
# im2col + GEMM path (1x1 convs, 7x7 stem, the single stride-2 3x3 conv)
# ----------------------------------------------------------------------------

def _conv_gemm(x, b_p, bias_p, meta, res, relu, out_dtype):
    kh, kw, stride, pad, dil, cout = (meta.kh, meta.kw, meta.stride,
                                      meta.padding, meta.dilation, meta.cout)
    x = x.astype(jnp.bfloat16)
    Nb, H, W, Cin = x.shape
    Ho = (H + 2 * pad - dil * (kh - 1) - 1) // stride + 1
    Wo = (W + 2 * pad - dil * (kw - 1) - 1) // stride + 1
    if pad:
        x = jnp.pad(x, ((0, 0), (pad, pad), (pad, pad), (0, 0)))
    if kh == 1 and kw == 1 and stride == 1:
        patches = x
    else:
        cols = []
        for i in range(kh):
            for j in range(kw):
                h0, w0 = i * dil, j * dil
                cols.append(x[:, h0:h0 + (Ho - 1) * stride + 1:stride,
                              w0:w0 + (Wo - 1) * stride + 1:stride, :])
        patches = cols[0] if len(cols) == 1 else jnp.concatenate(cols, axis=-1)

    K = kh * kw * Cin
    M = Nb * Ho * Wo
    a = patches.reshape(M, K)

    Kp, Np = b_p.shape
    TM = 256 if M > 256 else _round_up(M, 16)
    Mp = _round_up(M, TM)
    a_p = jnp.pad(a, ((0, Mp - M), (0, Kp - K)))

    res_p = None
    if res is not None:
        res_p = jnp.pad(res.astype(jnp.bfloat16).reshape(M, cout),
                        ((0, Mp - M), (0, Np - cout)))

    out = _gemm(a_p, b_p, bias_p, res_p, relu=relu, out_dtype=out_dtype, TM=TM)
    return out[:M, :cout].reshape(Nb, Ho, Wo, cout)


def conv2d(arrays, meta, x, res=None, relu=False, out_dtype=jnp.bfloat16):
    if meta.direct:
        assert res is None
        return _conv_direct(x, arrays["w"], arrays["bias"], meta, relu)
    return _conv_gemm(x, arrays["w"], arrays["bias"], meta, res, relu, out_dtype)


# ----------------------------------------------------------------------------
# 3x3/s2/p1 max-pool: running maximum over the 9 taps (fuses under the stem jit)
# ----------------------------------------------------------------------------

def maxpool_3x3_s2_p1(x):
    N, H, W, C = x.shape
    Ho = (H + 2 - 3) // 2 + 1
    Wo = (W + 2 - 3) // 2 + 1
    xp = jnp.pad(x, ((0, 0), (1, 1), (1, 1), (0, 0)),
                 constant_values=-jnp.inf)
    out = None
    for i in range(3):
        for j in range(3):
            v = xp[:, i:i + 2 * (Ho - 1) + 1:2, j:j + 2 * (Wo - 1) + 1:2, :]
            out = v if out is None else jnp.maximum(out, v)
    return out


# ----------------------------------------------------------------------------
# Parameter construction (deterministic synthetic weights, folded BatchNorm)
# ----------------------------------------------------------------------------

class ParamGen:
    def __init__(self, seed=0):
        self.key = jax.random.PRNGKey(seed)
        self.count = 0

    def _next(self):
        self.count += 1
        return jax.random.fold_in(self.key, self.count)

    def conv(self, kh, kw, cin, cout):
        std = (2.0 / (kh * kw * cin)) ** 0.5
        return std * jax.random.normal(self._next(), (kh, kw, cin, cout),
                                       jnp.float32)

    def bias(self, c):
        return 0.01 * jax.random.normal(self._next(), (c,), jnp.float32)

    def bn(self, c):
        k1, k2 = jax.random.split(self._next())
        gamma = 1.0 + 0.1 * jax.random.normal(k1, (c,), jnp.float32)
        beta = 0.05 * jax.random.normal(k2, (c,), jnp.float32)
        mean = jnp.zeros((c,), jnp.float32)
        var = jnp.ones((c,), jnp.float32)
        return (gamma, beta, mean, var)


def fold_bn(w, bn, eps=1e-5):
    # TODO(synk): BatchNorm reproduced in inference mode (folded running stats);
    # training-mode batch statistics are not reproduced.
    gamma, beta, mean, var = bn
    scale = gamma / jnp.sqrt(var + eps)
    return w * scale[None, None, None, :], beta - mean * scale


def prep_gemm_conv(w, bias, stride=1, padding=0, dilation=1):
    kh, kw, cin, cout = w.shape
    K = kh * kw * cin
    Kp = _round_up(K, 128)
    Np = _round_up(cout, 128)
    b_p = jnp.pad(w.reshape(K, cout).astype(jnp.bfloat16),
                  ((0, Kp - K), (0, Np - cout)))
    if bias is None:
        bias = jnp.zeros((cout,), jnp.float32)
    bias_p = jnp.pad(bias.astype(jnp.float32), (0, Np - cout)).reshape(1, Np)
    meta = ConvMeta(kh, kw, stride, padding, dilation, cin, cout, False)
    return meta, {"w": b_p, "bias": bias_p}


def prep_direct_conv(w, bias, dilation=1):
    kh, kw, cin, cout = w.shape
    wt = w.astype(jnp.bfloat16).reshape(kh * kw, cin, cout)
    if bias is None:
        bias = jnp.zeros((cout,), jnp.float32)
    meta = ConvMeta(kh, kw, 1, dilation * ((kh - 1) // 2), dilation,
                    cin, cout, True)
    return meta, {"w": wt, "bias": bias.astype(jnp.float32).reshape(1, cout)}


def make_bottleneck_params(pg, inplanes, planes, stride, dilation, downsample):
    width = planes

    def bn_conv(kh, kw, cin, cout, stride=1, padding=0, dilation=1):
        wf, bf = fold_bn(pg.conv(kh, kw, cin, cout), pg.bn(cout))
        if kh == 3 and stride == 1:
            return prep_direct_conv(wf, bf, dilation)
        return prep_gemm_conv(wf, bf, stride=stride, padding=padding,
                              dilation=dilation)

    m1, a1 = bn_conv(1, 1, inplanes, width)
    m2, a2 = bn_conv(3, 3, width, width, stride=stride, padding=dilation,
                     dilation=dilation)
    m3, a3 = bn_conv(1, 1, width, planes * 4)
    arrays = {"conv1": a1, "conv2": a2, "conv3": a3}
    md = None
    if downsample:
        md, ad = bn_conv(1, 1, inplanes, planes * 4, stride=stride)
        arrays["down"] = ad
    return BlockMeta(m1, m2, m3, md), arrays


def make_layer_params(pg, inplanes, dilation, planes, blocks, stride, dilate):
    previous_dilation = dilation
    if dilate:
        dilation *= stride
        stride = 1
    params = []
    downsample = (stride != 1) or (inplanes != planes * 4)
    params.append(make_bottleneck_params(pg, inplanes, planes, stride,
                                         previous_dilation, downsample))
    inplanes = planes * 4
    for _ in range(1, blocks):
        params.append(make_bottleneck_params(pg, inplanes, planes, 1,
                                             dilation, False))
    return params, inplanes, dilation


def build_backbone_layers(pg):
    inplanes, dilation = 64, 1
    cfg = [(64, 3, 1, False),     # layer1
           (128, 4, 2, False),    # layer2
           (256, 23, 2, True),    # layer3 (stride replaced by dilation)
           (512, 3, 2, True)]     # layer4 (stride replaced by dilation)
    layers = []
    for planes, blocks, stride, dilate in cfg:
        lp, inplanes, dilation = make_layer_params(pg, inplanes, dilation,
                                                   planes, blocks, stride,
                                                   dilate)
        layers.append(lp)
    return layers


# ----------------------------------------------------------------------------
# Forward pass (jitted at bottleneck / stem / head granularity; identical
# bottlenecks share a compile-cache entry via the static meta argument)
# ----------------------------------------------------------------------------

@partial(jax.jit, static_argnums=(0,))
def _pre_fwd(meta, arrays, x_nchw):
    x = jnp.transpose(x_nchw, (0, 2, 3, 1)).astype(jnp.bfloat16)
    y = conv2d(arrays, meta, x, relu=False)
    return y, jnp.transpose(y, (0, 3, 1, 2)).astype(jnp.float32)


@partial(jax.jit, static_argnums=(0,))
def _stem_fwd(meta, arrays, x):
    y = conv2d(arrays, meta, x, relu=True)
    return maxpool_3x3_s2_p1(y)


@partial(jax.jit, static_argnums=(0,))
def _bottleneck_fwd(meta, arrays, x):
    out = conv2d(arrays["conv1"], meta.conv1, x, relu=True)
    out = conv2d(arrays["conv2"], meta.conv2, out, relu=True)
    identity = x
    if meta.down is not None:
        identity = conv2d(arrays["down"], meta.down, x, relu=False)
    # conv3: residual add + ReLU fused into the GEMM epilogue
    return conv2d(arrays["conv3"], meta.conv3, out, res=identity, relu=True)


@partial(jax.jit, static_argnums=(0, 4, 5))
def _head_fwd(meta, arrays, feat, aux, aux_keep, low_level):
    high = conv2d(arrays, meta, feat, relu=False, out_dtype=jnp.float32)
    high = jnp.transpose(high, (0, 3, 1, 2))                     # -> NCHW
    if not low_level:
        return high
    low = jnp.transpose(aux, (0, 3, 1, 2)).astype(jnp.float32)[:, :aux_keep]
    return high, low


class TVDeeplabRes101EncoderPallas:
    """JAX/Pallas re-implementation of TVDeeplabRes101Encoder (use_aspp=False)."""

    def __init__(self, use_coco_init, dataset, aux_dim_keep=64,
                 use_aspp=False, seed=0):
        # TODO(synk): no pretrained ms-coco weights are loaded; all parameters
        # are deterministic synthetic initializations.
        # TODO(synk): ASPP branch (use_aspp=True) is not implemented; the
        # default forward (localconv on 2048-ch features) is reproduced.
        self.dataset = dataset
        self.aux_dim_keep = aux_dim_keep
        self.use_aspp = use_aspp
        self.features = {}  # mimics the layers_pre forward hook (Python side)

        pg = ParamGen(seed)
        dim_size = 5 if "PMs" in dataset else 30
        self.pre = prep_gemm_conv(pg.conv(1, 1, dim_size, 3), pg.bias(3))
        w, b = fold_bn(pg.conv(7, 7, 3, 64), pg.bn(64))
        self.stem = prep_gemm_conv(w, b, stride=2, padding=3)
        self.layers = build_backbone_layers(pg)
        self.local = prep_gemm_conv(pg.conv(1, 1, 2048, 256), None)  # bias=False
        self.asppconv_w = pg.conv(1, 1, 256, 256)                    # unused

    def __call__(self, x_in, low_level):
        # x_in: NCHW (PyTorch convention)
        if "CTP" in self.dataset or "PMs" in self.dataset:
            x, pre_feat = _pre_fwd(self.pre[0], self.pre[1], x_in)
            self.features["layers_pre"] = pre_feat
        else:
            x = jnp.transpose(x_in, (0, 2, 3, 1)).astype(jnp.bfloat16)
        x = _stem_fwd(self.stem[0], self.stem[1], x)
        aux = None
        for li, layer in enumerate(self.layers):
            for bm, ba in layer:
                x = _bottleneck_fwd(bm, ba, x)
            if li == 2:
                aux = x
        return _head_fwd(self.local[0], self.local[1], x, aux,
                         self.aux_dim_keep, low_level)


# ----------------------------------------------------------------------------

if __name__ == "__main__":
    key = jax.random.PRNGKey(0)
    # dataset='CTP' -> layers_pre expects dim_size=30 input channels (NCHW)
    x_in = jax.random.normal(key, (2, 30, 16, 16), jnp.float32)

    model = TVDeeplabRes101EncoderPallas(use_coco_init=False, dataset="CTP",
                                         aux_dim_keep=64, use_aspp=False)
    high, low = model(x_in, low_level=True)
    (high, low) = jax.block_until_ready((high, low))

    assert high.shape == (2, 256, 2, 2), high.shape     # localconv(layer4)
    assert low.shape == (2, 64, 2, 2), low.shape        # aux[:, :64]
    assert high.dtype == jnp.float32 and low.dtype == jnp.float32
    assert "layers_pre" in model.features
    print("KERNEL_OK")
</pallas_src>

<mosaic_0001>
module attributes {stable_mosaic.version = 11 : i64} {
  func.func @_gemm_kernel(%arg0: i32, %arg1: i32, %arg2: memref<256x128xbf16, #tpu.memory_space<vmem>>, %arg3: memref<128x128xbf16, #tpu.memory_space<vmem>>, %arg4: memref<1x128xf32, #tpu.memory_space<vmem>>, %arg5: memref<256x128xbf16, #tpu.memory_space<vmem>>) attributes {dimension_semantics = [#tpu.dimension_semantics<parallel>, #tpu.dimension_semantics<parallel>], iteration_bounds = array<i64: 2, 1>, scalar_prefetch = 0 : i64, scratch_operands = 0 : i64, tpu.core_type = #tpu.core_type<tc>, window_params = [{transform_indices = @transform_0, window_bounds = array<i64: 256, 128>}, {transform_indices = @transform_1, window_bounds = array<i64: 128, 128>}, {transform_indices = @transform_2, window_bounds = array<i64: 1, 128>}, {transform_indices = @transform_3, window_bounds = array<i64: 256, 128>}]} {
    %c0 = arith.constant 0 : index
    %c0_0 = arith.constant 0 : index
    %0 = vector.load %arg2[%c0, %c0_0] : memref<256x128xbf16, #tpu.memory_space<vmem>>, vector<256x128xbf16>
    %c0_1 = arith.constant 0 : index
    %c0_2 = arith.constant 0 : index
    %1 = vector.load %arg3[%c0_1, %c0_2] : memref<128x128xbf16, #tpu.memory_space<vmem>>, vector<128x128xbf16>
    %cst = arith.constant dense<0.000000e+00> : vector<256x128xf32>
    %2 = tpu.matmul %0, %1, %cst {dimension_numbers = #tpu.dot_dimension_numbers<[1], [0], [0], [1], [0, 0, 1, 1], [], []>} : vector<256x128xbf16>, vector<128x128xbf16>, vector<256x128xf32> -> vector<256x128xf32>
    %c0_3 = arith.constant 0 : index
    %c0_4 = arith.constant 0 : index
    %3 = vector.load %arg4[%c0_3, %c0_4] : memref<1x128xf32, #tpu.memory_space<vmem>>, vector<1x128xf32>
    %4 = vector.broadcast %3 : vector<1x128xf32> to vector<256x128xf32>
    %5 = arith.addf %2, %4 : vector<256x128xf32>
    %6 = arith.truncf %5 : vector<256x128xf32> to vector<256x128xbf16>
    %c0_5 = arith.constant 0 : index
    %c0_6 = arith.constant 0 : index
    %7 = vector.load %arg5[%c0_5, %c0_6] : memref<256x128xbf16, #tpu.memory_space<vmem>>, vector<256x128xbf16>
    tpu.vector_store %arg5[%c0_5, %c0_6], %6 {strides = array<i32>} : memref<256x128xbf16, #tpu.memory_space<vmem>>, vector<256x128xbf16>,
    return
  }
  func.func @transform_0(%arg0: i32, %arg1: i32) -> (i32, i32) {
    %c0_i32 = arith.constant 0 : i32
    %c0_i32_0 = arith.constant 0 : i32
    return %arg0, %c0_i32 : i32, i32
  }
  func.func @transform_1(%arg0: i32, %arg1: i32) -> (i32, i32) {
    %c0_i32 = arith.constant 0 : i32
    %c0_i32_0 = arith.constant 0 : i32
    return %c0_i32, %arg1 : i32, i32
  }
  func.func @transform_2(%arg0: i32, %arg1: i32) -> (i32, i32) {
    %c0_i32 = arith.constant 0 : i32
    %c0_i32_0 = arith.constant 0 : i32
    return %c0_i32, %arg1 : i32, i32
  }
  func.func @transform_3(%arg0: i32, %arg1: i32) -> (i32, i32) {
    %c0_i32 = arith.constant 0 : i32
    return %arg0, %arg1 : i32, i32
  }
}

</mosaic_0001>

<bundles_post_ra>
// kernel: _pre_fwd.1
= control target key start
LH: loop header
LB: loop body
LE: loop exit
PB: predicated region body
PF: predicated region fallthrough
CT: control target
= control target key end

     0   :  { %s1225_s12 = smov 0   ;;  %s1227_s13 = smov 0   ;;  %s1362_s0 = inlined_call_operand.vmem [shape: bf16[512,128], index: 0, kind: input, shape index: {}]   ;;  %s1363_s1 = inlined_call_operand.vmem [shape: bf16[128,128], index: 1, kind: input, shape index: {}]   ;;  %s1364_s2 = inlined_call_operand.vmem [shape: f32[1,128], index: 2, kind: input, shape index: {}]   ;;  %s1365_s3 = inlined_call_operand.vmem [shape: bf16[512,128], index: 3, kind: output, shape index: {}]  }
   0x1   :  { %s1229_s14 = smov 0  }
   0x2 LB: > { %s25_s15 = sadd.s32 1, %s1199_s13  ;;  %p854_p0 = scmp.ge.s32.totalorder %s1203_s14, 1  ;;  %s1203_s14 = sphi %s1229_s14, %s13_s14   ;;  %s1199_s13 = sphi %s1227_s13, %s1367_s13   ;;  %s1195_s12 = sphi %s1225_s12, %s1366_s12  }
   0x3   : > { %p27_p1 = scmp.ge.s32.totalorder %s25_s15, 2  ;;  %p169_p2 = scmp.lt.s32.totalorder %s1203_s14, 3 }
   0x5   : > { %s1369_s15 = smov (%p27_p1, %s25_s15), 0  ;;  %p170_p3 = pnand %p854_p0, %p169_p2 }
   0x6   : > { %v1157_v0 = vld [vmem:[%s1363_s1] sm:$0xff] (!%p170_p3)   ;;  %s855_s18 = sshll.u32 (!%p170_p3), %s1195_s12, 5  ;;  %v1158_v1 = vld [vmem:[%s1363_s1 + $0x8] sm:$0xff] (!%p170_p3)   ;;  %v1159_v2 = vld [vmem:[%s1363_s1 + $0x10] sm:$0xff] (!%p170_p3)  }
   0x7   : > { %173 = sbr.rel (%p170_p3) target bundleno = 283 (0x11b), region = 32  ;;  %p204_p4 = scmp.lt.s32.totalorder (!%p170_p3), %s855_s18, 63  ;;  %1069 = vmatprep.subr.bf16.mxu0 (!%p170_p3), %v1157_v0  ;;  %1117 = vmatprep.subr.bf16.mxu1 (!%p170_p3), %v1157_v0  ;;  %v1160_v3 = vld [vmem:[%s1363_s1 + $0x18] sm:$0xff] (!%p170_p3)   ;;  %v1161_v6 = vld [vmem:[%s1363_s1 + $0x20] sm:$0xff] (!%p170_p3)   ;;  %v1162_v7 = vld [vmem:[%s1363_s1 + $0x28] sm:$0xff] (!%p170_p3)  }
   0x8   : > { %1070 = vmatpush3.bf16.msra.mxu0 (!%p170_p3), %v1157_v0  ;;  %1125 = vmatpush3.bf16.msra.mxu1 (!%p170_p3), %v1157_v0  ;;  %v1163_v8 = vld [vmem:[%s1363_s1 + $0x30] sm:$0xff] (!%p170_p3)   ;;  %v1164_v9 = vld [vmem:[%s1363_s1 + $0x38] sm:$0xff] (!%p170_p3)   ;;  %v1296_v25 = vld [vmem:[%s1364_s2] ss:$0 sm:$0xff] (!%p170_p3) }
   0x9   : > { %1071 = vmatprep.subr.bf16.mxu0 (!%p170_p3), %v1158_v1  ;;  %1118 = vmatprep.subr.bf16.mxu1 (!%p170_p3), %v1158_v1 }
   0xc   : > { %1072 = vmatpush3.bf16.msra.mxu0 (!%p170_p3), %v1158_v1  ;;  %1126 = vmatpush3.bf16.msra.mxu1 (!%p170_p3), %v1158_v1 }
   0xd   : > { %1073 = vmatprep.subr.bf16.mxu0 (!%p170_p3), %v1159_v2  ;;  %1119 = vmatprep.subr.bf16.mxu1 (!%p170_p3), %v1159_v2 }
   0xe   : > { %s1371_s18 = smov (!%p204_p4, %s855_s18), 63 }
   0xf   : > { %s856_s23 = sshll.u32 %s1371_s18, 2 }
  0x10   : > { %s1260_s26 = scalar_lea.vmem %s1362_s0, %s856_s23  ;;  %1074 = vmatpush3.bf16.msra.mxu0 %v1159_v2  ;;  %1127 = vmatpush3.bf16.msra.mxu1 %v1159_v2  ;;  %s1309_s17 = scalar_lea.vmem %s1365_s3, %s856_s23 }
  0x11   : > { %v1165_v4 = vld [vmem:[%s1260_s26] sm:$0xff]   ;;  %1075 = vmatprep.subr.bf16.mxu0 %v1160_v3  ;;  %1120 = vmatprep.subr.bf16.mxu1 %v1160_v3  ;;  %v1167_v10 = vld [vmem:[%s1260_s26 + $0x8] sm:$0xff]   ;;  %v1169_v12 = vld [vmem:[%s1260_s26 + $0x10] sm:$0xff]  }
  0x12   : > { %v1166_v5 = vld [vmem:[%s1260_s26 + $0x40] sm:$0xff]   ;;  %1085 = vmatprep.mubr.bf16.mxu0 %v1165_v4  ;;  %v1168_v11 = vld [vmem:[%s1260_s26 + $0x48] sm:$0xff]   ;;  %v1170_v13 = vld [vmem:[%s1260_s26 + $0x50] sm:$0xff]  }
  0x13   : > { %1101 = vmatprep.mubr.bf16.mxu1 %v1166_v5  ;;  %v1171_v14 = vld [vmem:[%s1260_s26 + $0x18] sm:$0xff]   ;;  %v1173_v16 = vld [vmem:[%s1260_s26 + $0x20] sm:$0xff]   ;;  %v1175_v18 = vld [vmem:[%s1260_s26 + $0x28] sm:$0xff]  }
  0x14   : > { %1076 = vmatpush3.bf16.msra.mxu0 %v1160_v3  ;;  %1128 = vmatpush3.bf16.msra.mxu1 %v1160_v3  ;;  %v1172_v15 = vld [vmem:[%s1260_s26 + $0x58] sm:$0xff]   ;;  %v1174_v17 = vld [vmem:[%s1260_s26 + $0x60] sm:$0xff]   ;;  %v1176_v19 = vld [vmem:[%s1260_s26 + $0x68] sm:$0xff]  }
  0x15   : > { %1077 = vmatprep.subr.bf16.mxu0 %v1161_v6  ;;  %1121 = vmatprep.subr.bf16.mxu1 %v1161_v6  ;;  %v1177_v20 = vld [vmem:[%s1260_s26 + $0x30] sm:$0xff]   ;;  %v1179_v22 = vld [vmem:[%s1260_s26 + $0x38] sm:$0xff]  }
  0x16   : > { %v1178_v21 = vld [vmem:[%s1260_s26 + $0x70] sm:$0xff]   ;;  %v1180_v23 = vld [vmem:[%s1260_s26 + $0x78] sm:$0xff]  }
  0x18   : > { %1078 = vmatpush3.bf16.msra.mxu0 %v1161_v6  ;;  %1129 = vmatpush3.bf16.msra.mxu1 %v1161_v6 }
  0x19   : > { %1079 = vmatprep.subr.bf16.mxu0 %v1162_v7  ;;  %1122 = vmatprep.subr.bf16.mxu1 %v1162_v7 }
  0x1c   : > { %1080 = vmatpush3.bf16.msra.mxu0 %v1162_v7  ;;  %1130 = vmatpush3.bf16.msra.mxu1 %v1162_v7 }
  0x1d   : > { %1081 = vmatprep.subr.bf16.mxu0 %v1163_v8  ;;  %1123 = vmatprep.subr.bf16.mxu1 %v1163_v8 }
  0x20   : > { %1082 = vmatpush3.bf16.msra.mxu0 %v1163_v8  ;;  %1131 = vmatpush3.bf16.msra.mxu1 %v1163_v8 }
  0x21   : > { %1083 = vmatprep.subr.bf16.mxu0 %v1164_v9  ;;  %1124 = vmatprep.subr.bf16.mxu1 %v1164_v9 }
  0x24   : > { %1084 = vmatpush3.bf16.msra.mxu0 %v1164_v9  ;;  %1132 = vmatpush3.bf16.msra.mxu1 %v1164_v9 }
  0x27   : > { %1086 = vmatmul.mubr.bf16.vlgmr.msra.gmra.mrb[0].mxu0 %v1167_v10  ;;  %1102 = vmatmul.mubr.bf16.vlgmr.msra.gmra.mrb[0].mxu1 %v1168_v11 }
  0x28   : > { %1089 = vmatprep.mubr.bf16.mxu0 %v1169_v12  ;;  %1105 = vmatprep.mubr.bf16.mxu1 %v1170_v13 }
  0x2f   : > { %1090 = vmatmul.mubr.bf16.gmra.mrb[4].mxu0 %v1171_v14  ;;  %1106 = vmatmul.mubr.bf16.gmra.mrb[4].mxu1 %v1172_v15 }
  0x30   : > { %1093 = vmatprep.mubr.bf16.mxu0 %v1173_v16  ;;  %1109 = vmatprep.mubr.bf16.mxu1 %v1174_v17 }
  0x37   : > { %1094 = vmatmul.mubr.bf16.gmra.mrb[8].mxu0 %v1175_v18  ;;  %1110 = vmatmul.mubr.bf16.gmra.mrb[8].mxu1 %v1176_v19 }
  0x38   : > { %1097 = vmatprep.mubr.bf16.mxu0 %v1177_v20  ;;  %1113 = vmatprep.mubr.bf16.mxu1 %v1178_v21 }
  0x3f   : > { %1098 = vmatmul.mubr.bf16.gmra.mrb[12].mxu0 %v1179_v22  ;;  %1114 = vmatmul.mubr.bf16.gmra.mrb[12].mxu1 %v1180_v23 }
  0xfa   : > { %v1087_v24 = vpop.f32.mrb[0].mxu0  ;;  %v1103_v26 = vpop.f32.mrb[0].mxu1 }
  0xfb   : > { %v459_v27 = vpop.f32.mrb[1].mxu0  ;;  %v523_v28 = vpop.f32.mrb[1].mxu1  ;;  %v468_v31 = vadd.f32 %v1087_v24, %v1296_v25  ;;  %v532_v32 = vadd.f32 %v1103_v26, %v1296_v25 }
  0xfc   : > { %v1088_v29 = vpop.f32.mrb[2].mxu0  ;;  %v1104_v30 = vpop.f32.mrb[2].mxu1  ;;  %v460_v37 = vadd.f32 %v1296_v25, %v459_v27  ;;  %v524_v38 = vadd.f32 %v1296_v25, %v523_v28 }
  0xfd   : > { %v471_v33 = vadd.f32 %v1088_v29, %v1296_v25  ;;  %v535_v34 = vadd.f32 %v1104_v30, %v1296_v25  ;;  %v462_v35 = vpop.f32.mrb[3].mxu0  ;;  %v526_v36 = vpop.f32.mrb[3].mxu1 }
  0xfe   : > { %v463_v39 = vadd.f32 %v1296_v25, %v462_v35  ;;  %v527_v40 = vadd.f32 %v1296_v25, %v526_v36 }
  0xff   : > { %v958_v41 = vpack.c.bf16 %v471_v33, %v468_v31  ;;  %v998_v42 = vpack.c.bf16 %v535_v34, %v532_v32 }
 0x100   : > { %v953_v43 = vpack.c.bf16 %v463_v39, %v460_v37  ;;  %v993_v44 = vpack.c.bf16 %v527_v40, %v524_v38 }
 0x101   : > { %1030 = vst [vmem:[%s1309_s17 + $0x8] sm:$0xff] %v958_v41   ;;  %1038 = vst [vmem:[%s1309_s17 + $0x48] sm:$0xff] %v998_v42  }
 0x102   : > { %954 = vst [vmem:[%s1309_s17] sm:$0xff] %v953_v43   ;;  %1037 = vst [vmem:[%s1309_s17 + $0x40] sm:$0xff] %v993_v44   ;;  %v1091_v45 = vpop.f32.mrb[4].mxu0  ;;  %v1107_v46 = vpop.f32.mrb[4].mxu1 }
 0x103   : > { %v475_v47 = vpop.f32.mrb[5].mxu0  ;;  %v539_v48 = vpop.f32.mrb[5].mxu1  ;;  %v484_v51 = vadd.f32 %v1091_v45, %v1296_v25  ;;  %v548_v52 = vadd.f32 %v1107_v46, %v1296_v25 }
 0x104   : > { %v1092_v49 = vpop.f32.mrb[6].mxu0  ;;  %v1108_v50 = vpop.f32.mrb[6].mxu1  ;;  %v476_v57 = vadd.f32 %v1296_v25, %v475_v47  ;;  %v540_v58 = vadd.f32 %v1296_v25, %v539_v48 }
 0x105   : > { %v487_v53 = vadd.f32 %v1092_v49, %v1296_v25  ;;  %v551_v54 = vadd.f32 %v1108_v50, %v1296_v25  ;;  %v478_v55 = vpop.f32.mrb[7].mxu0  ;;  %v542_v56 = vpop.f32.mrb[7].mxu1 }
 0x106   : > { %v479_v59 = vadd.f32 %v1296_v25, %v478_v55  ;;  %v543_v60 = vadd.f32 %v1296_v25, %v542_v56 }
 0x107   : > { %v968_v61 = vpack.c.bf16 %v487_v53, %v484_v51  ;;  %v1008_v62 = vpack.c.bf16 %v551_v54, %v548_v52 }
 0x108   : > { %v963_v63 = vpack.c.bf16 %v479_v59, %v476_v57  ;;  %v1003_v0 = vpack.c.bf16 %v543_v60, %v540_v58 }
 0x109   : > { %1032 = vst [vmem:[%s1309_s17 + $0x18] sm:$0xff] %v968_v61   ;;  %1040 = vst [vmem:[%s1309_s17 + $0x58] sm:$0xff] %v1008_v62  }
 0x10a   : > { %1031 = vst [vmem:[%s1309_s17 + $0x10] sm:$0xff] %v963_v63   ;;  %1039 = vst [vmem:[%s1309_s17 + $0x50] sm:$0xff] %v1003_v0   ;;  %v1095_v1 = vpop.f32.mrb[8].mxu0  ;;  %v1111_v2 = vpop.f32.mrb[8].mxu1 }
 0x10b   : > { %v491_v3 = vpop.f32.mrb[9].mxu0  ;;  %v555_v4 = vpop.f32.mrb[9].mxu1  ;;  %v500_v7 = vadd.f32 %v1095_v1, %v1296_v25  ;;  %v564_v8 = vadd.f32 %v1111_v2, %v1296_v25 }
 0x10c   : > { %v1096_v5 = vpop.f32.mrb[10].mxu0  ;;  %v1112_v6 = vpop.f32.mrb[10].mxu1  ;;  %v492_v13 = vadd.f32 %v1296_v25, %v491_v3  ;;  %v556_v14 = vadd.f32 %v1296_v25, %v555_v4 }
 0x10d   : > { %v503_v9 = vadd.f32 %v1096_v5, %v1296_v25  ;;  %v567_v10 = vadd.f32 %v1112_v6, %v1296_v25  ;;  %v494_v11 = vpop.f32.mrb[11].mxu0  ;;  %v558_v12 = vpop.f32.mrb[11].mxu1 }
 0x10e   : > { %v495_v15 = vadd.f32 %v1296_v25, %v494_v11  ;;  %v559_v16 = vadd.f32 %v1296_v25, %v558_v12 }
 0x10f   : > { %v978_v17 = vpack.c.bf16 %v503_v9, %v500_v7  ;;  %v1018_v18 = vpack.c.bf16 %v567_v10, %v564_v8 }
 0x110   : > { %v973_v19 = vpack.c.bf16 %v495_v15, %v492_v13  ;;  %v1013_v20 = vpack.c.bf16 %v559_v16, %v556_v14 }
 0x111   : > { %1034 = vst [vmem:[%s1309_s17 + $0x28] sm:$0xff] %v978_v17   ;;  %1042 = vst [vmem:[%s1309_s17 + $0x68] sm:$0xff] %v1018_v18  }
 0x112   : > { %1033 = vst [vmem:[%s1309_s17 + $0x20] sm:$0xff] %v973_v19   ;;  %1041 = vst [vmem:[%s1309_s17 + $0x60] sm:$0xff] %v1013_v20   ;;  %v1099_v21 = vpop.f32.mrb[12].mxu0  ;;  %v1115_v22 = vpop.f32.mrb[12].mxu1 }
 0x113   : > { %v507_v23 = vpop.f32.mrb[13].mxu0  ;;  %v571_v24 = vpop.f32.mrb[13].mxu1  ;;  %v516_v28 = vadd.f32 %v1099_v21, %v1296_v25  ;;  %v580_v29 = vadd.f32 %v1115_v22, %v1296_v25 }
 0x114   : > { %v1100_v26 = vpop.f32.mrb[14].mxu0  ;;  %v1116_v27 = vpop.f32.mrb[14].mxu1  ;;  %v508_v34 = vadd.f32 %v1296_v25, %v507_v23  ;;  %v572_v35 = vadd.f32 %v1296_v25, %v571_v24 }
 0x115   : > { %v519_v30 = vadd.f32 %v1100_v26, %v1296_v25  ;;  %v583_v31 = vadd.f32 %v1116_v27, %v1296_v25  ;;  %v510_v32 = vpop.f32.mrb[15].mxu0  ;;  %v574_v33 = vpop.f32.mrb[15].mxu1 }
 0x116   : > { %v511_v36 = vadd.f32 %v1296_v25, %v510_v32  ;;  %v575_v37 = vadd.f32 %v1296_v25, %v574_v33 }
 0x117   : > { %v988_v38 = vpack.c.bf16 %v519_v30, %v516_v28  ;;  %v1028_v39 = vpack.c.bf16 %v583_v31, %v580_v29 }
 0x118   : > { %v983_v40 = vpack.c.bf16 %v511_v36, %v508_v34  ;;  %v1023_v41 = vpack.c.bf16 %v575_v37, %v572_v35 }
 0x119   : > { %1036 = vst [vmem:[%s1309_s17 + $0x38] sm:$0xff] %v988_v38   ;;  %1044 = vst [vmem:[%s1309_s17 + $0x78] sm:$0xff] %v1028_v39  }
 0x11a   : > { %1035 = vst [vmem:[%s1309_s17 + $0x30] sm:$0xff] %v983_v40   ;;  %1043 = vst [vmem:[%s1309_s17 + $0x70] sm:$0xff] %v1023_v41  }
 0x11b PF: > { %s13_s14 = sadd.s32 1, %s1203_s14   ;;  %s1366_s12 = smov %s1199_s13 }
 0x11c   : > { %p10_p5 = scmp.ge.s32.totalorder %s13_s14, 4   ;;  %s1367_s13 = smov %s1369_s15 }
 0x11e   :  { %12 = sbr.rel (!%p10_p5) target bundleno = 2 (0x2), region = 68 }

</bundles_post_ra>
